<compile_context>
chip_gen: v6e
topology: v6e:2x2x1
jax: 0.10.0
libtpu: 0.0.40
codegen_flags: <defaults>
</compile_context>

<pallas_src>
import functools

import jax
import jax.numpy as jnp
from jax.experimental import pallas as pl
from jax.experimental.pallas import tpu as pltpu

EPSILON = 1e-5


def _dice_partial_kernel(logits_ref, target_ref, inter_ref, denom_ref, *,
                         steps_per, tile_n, n_valid, needs_mask):
    """Accumulate per-channel partial intersect / denominator sums.

    Grid: (n_par, steps_per). Axis 0 is an independent ("parallel") split of
    the flattened spatial dim; axis 1 is the sequential reduction within a
    split. The (1, C, 1) output blocks stay resident across axis 1 and act as
    accumulators (no scratch needed).
    """
    j = pl.program_id(1)

    @pl.when(j == 0)
    def _():
        inter_ref[...] = jnp.zeros_like(inter_ref)
        denom_ref[...] = jnp.zeros_like(denom_ref)

    x = logits_ref[...].astype(jnp.float32)                       # (C, TN)
    # sigmoid(x) == 0.5 * (tanh(x/2) + 1): a single EUP push per vreg instead
    # of the exp + reciprocal pair, plus two cheap VPU ops.
    p = 0.5 * (jnp.tanh(0.5 * x) + 1.0)                           # (C, TN)

    tgt = target_ref[...].astype(jnp.int32)                       # (1, TN)
    # Grid-invariant class-id iota (viota on the XLU slot); cheap even if
    # Mosaic does not hoist it out of the grid loop.
    class_ids = jax.lax.broadcasted_iota(jnp.int32, p.shape, 0)   # (C, TN)
    cls_match = tgt == class_ids                                  # (C, TN) bool

    if needs_mask:
        # Ragged tail / clamped redundant steps: zero out every column whose
        # global index is >= the true N (also covers OOB garbage from the
        # partial last block).
        col0 = (pl.program_id(0) * steps_per + j) * tile_n
        lane = jax.lax.broadcasted_iota(jnp.int32, (1, tile_n), 1)
        valid = (lane + col0) < n_valid                           # (1, TN)
        p = jnp.where(valid, p, 0.0)
        cls_match = jnp.logical_and(cls_match, valid)

    # intersect_c = sum_n p*onehot ; denom_c = sum_n (p + onehot), fused into
    # one select each (no bool->f32 convert, only two lane-reduction chains).
    inter = jnp.sum(jnp.where(cls_match, p, 0.0), axis=1, keepdims=True)
    denom = jnp.sum(jnp.where(cls_match, p + 1.0, p), axis=1, keepdims=True)

    inter_ref[...] += inter[None]                                 # (1, C, 1)
    denom_ref[...] += denom[None]


def _is_multicore_chip():
    """Best-effort: does a 'parallel' grid axis shard across >1 TensorCore
    (v7x dual-TC, v4/v5p megacore)?  Safe fallback: False."""
    try:
        kind = jax.devices()[0].device_kind.lower()
    except Exception:
        return False
    return any(tag in kind for tag in ("v7", "7x", "v4", "v5p"))


def _choose_tiling(n, c, in_itemsize, max_tile_n=16384, force_n_par=None):
    """Pick (tile_n, n_par, steps_per).

    Double-buffered input VMEM per column: logits cost c*itemsize bytes, the
    (1, tile_n) label block is sublane-padded to ~32 bytes regardless of its
    dtype width.
    """
    budget = 8 * 1024 * 1024
    per_col = 2 * (c * in_itemsize + 32)
    cap = max((min(budget // per_col, max_tile_n) // 128) * 128, 128)

    if n <= cap:
        # Single block spanning the whole axis: block dim == full array dim is
        # always legal (no 128-alignment / padding needed).
        tile_n, total_steps = n, 1
    else:
        tile_n = cap
        if n % 128 == 0:
            # Prefer an exact divisor of n near the cap: avoids the ragged-tail
            # mask entirely on nicely shaped inputs (e.g. 512x512).
            n128 = n // 128
            for d in range(cap // 128, max(cap // 256, 1), -1):
                if n128 % d == 0:
                    tile_n = d * 128
                    break
        total_steps = -(-n // tile_n)

    if force_n_par is not None:
        n_par = force_n_par
    elif total_steps % 4 == 0:
        n_par = 4
    elif total_steps % 2 == 0:
        n_par = 2
    elif total_steps >= 3 and _is_multicore_chip():
        # Non-divisible split: worth <=1 redundant (DMA-elided, zero-masked)
        # step per split to keep both TensorCores busy on v7x / megacore.
        n_par = 2
    else:
        n_par = 1
    n_par = max(1, min(n_par, total_steps))
    steps_per = -(-total_steps // n_par)
    return tile_n, n_par, steps_per


def dice_loss_2d(logits, target, classes, *, max_tile_n=16384, force_n_par=None):
    """logits: (1, C, H, W) float; target: (1, H, W) int.

    Returns (loss_scalar, per_channel_dice[C]) mirroring DiceLoss2D.forward
    (sigmoid normalization path).
    """
    assert logits.ndim == 4 and logits.shape[0] == 1 and logits.shape[1] == classes
    _, C, H, W = logits.shape
    N = H * W

    # flatten(tensor) == view(classes, -1) for batch=1.
    # TODO(synk): the reference hard-codes target.reshape(1, 14, 512, 512); it is
    # generalized here to the equivalent "batch of 1" for any (C, H, W).
    x = logits.reshape(C, N)            # native dtype; f32 upcast happens in-kernel
    t = target.reshape(1, N)
    if t.dtype.itemsize > 4 or not jnp.issubdtype(t.dtype, jnp.integer):
        t = t.astype(jnp.int32)         # only when the native dtype cannot stream

    tile_n, n_par, steps_per = _choose_tiling(
        N, C, x.dtype.itemsize, max_tile_n=max_tile_n, force_n_par=force_n_par)
    total_steps = -(-N // tile_n)
    needs_mask = (n_par * steps_per * tile_n) != N
    last_block = total_steps - 1

    if n_par * steps_per == total_steps:
        def blk(p, j):
            return p * steps_per + j
    else:
        # Redundant trailing steps re-point at the last real block: consecutive
        # identical block indices let the pipeline skip the DMA, and the
        # in-kernel column mask zeroes their contribution.
        def blk(p, j):
            return jnp.minimum(p * steps_per + j, last_block)

    kernel = functools.partial(
        _dice_partial_kernel,
        steps_per=steps_per, tile_n=tile_n, n_valid=N, needs_mask=needs_mask)

    inter_parts, denom_parts = pl.pallas_call(
        kernel,
        out_shape=(
            jax.ShapeDtypeStruct((n_par, C, 1), jnp.float32),   # partial intersect
            jax.ShapeDtypeStruct((n_par, C, 1), jnp.float32),   # partial denominator
        ),
        grid_spec=pltpu.PrefetchScalarGridSpec(
            num_scalar_prefetch=0,
            grid=(n_par, steps_per),
            in_specs=[
                pl.BlockSpec((C, tile_n), lambda p, j: (0, blk(p, j))),
                pl.BlockSpec((1, tile_n), lambda p, j: (0, blk(p, j))),
            ],
            out_specs=[
                pl.BlockSpec((1, C, 1), lambda p, j: (p, 0, 0)),
                pl.BlockSpec((1, C, 1), lambda p, j: (p, 0, 0)),
            ],
        ),
        compiler_params=pltpu.CompilerParams(
            dimension_semantics=("parallel", "arbitrary"),
            vmem_limit_bytes=32 * 1024 * 1024,
        ),
    )(x, t)

    # Tiny JAX epilogue: combine per-split partials, form dice / loss.
    intersect = jnp.sum(inter_parts[:, :, 0], axis=0)        # (C,)
    denominator = jnp.sum(denom_parts[:, :, 0], axis=0)      # (C,)
    dice = 2.0 * intersect / jnp.maximum(denominator, EPSILON)
    loss = jnp.mean(1.0 - dice)
    return loss, dice


def _reference(logits, target, classes):
    C = classes
    p = jax.nn.sigmoid(logits.astype(jnp.float32)).reshape(C, -1)
    onehot = jax.nn.one_hot(target.reshape(-1), C, dtype=jnp.float32).T  # (C, N)
    intersect = jnp.sum(p * onehot, axis=-1)
    denom = jnp.maximum(jnp.sum(p + onehot, axis=-1), EPSILON)
    dice = 2.0 * intersect / denom
    return jnp.mean(1.0 - dice), dice


if __name__ == "__main__":
    key = jax.random.PRNGKey(0)
    k1, k2, k3, k4, k5, k6 = jax.random.split(key, 6)

    # Case 1: small 128-aligned spatial size, f32 logits (single-block path).
    C, H, W = 4, 16, 16
    logits = jax.random.normal(k1, (1, C, H, W), dtype=jnp.float32)
    target = jax.random.randint(k2, (1, H, W), 0, C, dtype=jnp.int32)
    loss, dice = dice_loss_2d(logits, target, classes=C)
    jax.block_until_ready((loss, dice))
    ref_loss, ref_dice = _reference(logits, target, C)
    assert jnp.allclose(loss, ref_loss, atol=5e-5, rtol=5e-5), (loss, ref_loss)
    assert jnp.allclose(dice, ref_dice, atol=5e-5, rtol=5e-5), (dice, ref_dice)

    # Case 2: non-128-multiple spatial size, bf16 logits streamed at native
    # width (single full-extent block, no wrapper-side padding copies).
    C2, H2, W2 = 5, 9, 21
    logits2 = jax.random.normal(k3, (1, C2, H2, W2), dtype=jnp.bfloat16)
    target2 = jax.random.randint(k4, (1, H2, W2), 0, C2, dtype=jnp.int32)
    loss2, dice2 = dice_loss_2d(logits2, target2, classes=C2)
    jax.block_until_ready((loss2, dice2))
    ref_loss2, ref_dice2 = _reference(logits2, target2, C2)
    assert jnp.allclose(loss2, ref_loss2, atol=1e-4, rtol=1e-4), (loss2, ref_loss2)
    assert jnp.allclose(dice2, ref_dice2, atol=1e-4, rtol=1e-4), (dice2, ref_dice2)

    # Case 3: multi-tile streaming with a ragged tail AND a forced parallel
    # split whose step count does not divide evenly (exercises the in-kernel
    # column mask and the clamped, DMA-elided redundant steps).
    C3, H3, W3 = 6, 96, 97
    logits3 = jax.random.normal(k5, (1, C3, H3, W3), dtype=jnp.float32)
    target3 = jax.random.randint(k6, (1, H3, W3), 0, C3, dtype=jnp.int32)
    loss3, dice3 = dice_loss_2d(logits3, target3, classes=C3,
                                max_tile_n=2048, force_n_par=2)
    jax.block_until_ready((loss3, dice3))
    ref_loss3, ref_dice3 = _reference(logits3, target3, C3)
    assert jnp.allclose(loss3, ref_loss3, atol=5e-5, rtol=5e-5), (loss3, ref_loss3)
    assert jnp.allclose(dice3, ref_dice3, atol=5e-5, rtol=5e-5), (dice3, ref_dice3)

    print("KERNEL_OK")
</pallas_src>

<mosaic_0001>
module attributes {stable_mosaic.version = 11 : i64} {
  func.func @_dice_partial_kernel(%arg0: i32, %arg1: i32, %arg2: memref<4x256xf32, #tpu.memory_space<vmem>>, %arg3: memref<1x256xi32, #tpu.memory_space<vmem>>, %arg4: memref<1x4x1xf32, #tpu.memory_space<vmem>>, %arg5: memref<1x4x1xf32, #tpu.memory_space<vmem>>) attributes {dimension_semantics = [#tpu.dimension_semantics<parallel>, #tpu.dimension_semantics<arbitrary>], iteration_bounds = array<i64: 1, 1>, scalar_prefetch = 0 : i64, scratch_operands = 0 : i64, tpu.core_type = #tpu.core_type<tc>, window_params = [{transform_indices = @transform_0, window_bounds = array<i64: 4, 256>}, {transform_indices = @transform_1, window_bounds = array<i64: 1, 256>}, {transform_indices = @transform_2, window_bounds = array<i64: 1, 4, 1>}, {transform_indices = @transform_3, window_bounds = array<i64: 1, 4, 1>}]} {
    %c0_i32 = arith.constant 0 : i32
    %0 = arith.cmpi eq, %arg1, %c0_i32 : i32
    %1 = arith.extui %0 : i1 to i32
    %c0_i32_0 = arith.constant 0 : i32
    %2 = arith.cmpi ne, %1, %c0_i32_0 : i32
    scf.if %2 {
      %cst_22 = arith.constant 0.000000e+00 : f32
      %32 = vector.broadcast %cst_22 : f32 to vector<1x4x1xf32>
      %c0_23 = arith.constant 0 : index
      %c0_24 = arith.constant 0 : index
      %c0_25 = arith.constant 0 : index
      %33 = vector.load %arg4[%c0_23, %c0_24, %c0_25] : memref<1x4x1xf32, #tpu.memory_space<vmem>>, vector<1x4x1xf32>
      tpu.vector_store %arg4[%c0_23, %c0_24, %c0_25], %32 {strides = array<i32>} : memref<1x4x1xf32, #tpu.memory_space<vmem>>, vector<1x4x1xf32>,
      %cst_26 = arith.constant 0.000000e+00 : f32
      %34 = vector.broadcast %cst_26 : f32 to vector<1x4x1xf32>
      %c0_27 = arith.constant 0 : index
      %c0_28 = arith.constant 0 : index
      %c0_29 = arith.constant 0 : index
      %35 = vector.load %arg5[%c0_27, %c0_28, %c0_29] : memref<1x4x1xf32, #tpu.memory_space<vmem>>, vector<1x4x1xf32>
      tpu.vector_store %arg5[%c0_27, %c0_28, %c0_29], %34 {strides = array<i32>} : memref<1x4x1xf32, #tpu.memory_space<vmem>>, vector<1x4x1xf32>,
    } else {
    }
    %c0 = arith.constant 0 : index
    %c0_1 = arith.constant 0 : index
    %3 = vector.load %arg2[%c0, %c0_1] : memref<4x256xf32, #tpu.memory_space<vmem>>, vector<4x256xf32>
    %cst = arith.constant 5.000000e-01 : f32
    %4 = vector.broadcast %cst : f32 to vector<4x256xf32>
    %5 = arith.mulf %4, %3 : vector<4x256xf32>
    %6 = math.tanh %5 : vector<4x256xf32>
    %cst_2 = arith.constant 1.000000e+00 : f32
    %7 = vector.broadcast %cst_2 : f32 to vector<4x256xf32>
    %8 = arith.addf %6, %7 : vector<4x256xf32>
    %cst_3 = arith.constant 5.000000e-01 : f32
    %9 = vector.broadcast %cst_3 : f32 to vector<4x256xf32>
    %10 = arith.mulf %9, %8 : vector<4x256xf32>
    %c0_4 = arith.constant 0 : index
    %c0_5 = arith.constant 0 : index
    %11 = vector.load %arg3[%c0_4, %c0_5] : memref<1x256xi32, #tpu.memory_space<vmem>>, vector<1x256xi32>
    %12 = tpu.iota {dimensions = array<i32: 0>} : vector<4x256xi32>
    %13 = vector.broadcast %11 : vector<1x256xi32> to vector<4x256xi32>
    %14 = arith.cmpi eq, %13, %12 : vector<4x256xi32>
    %cst_6 = arith.constant 0.000000e+00 : f32
    %15 = vector.broadcast %cst_6 : f32 to vector<4x256xf32>
    %16 = arith.select %14, %10, %15 : vector<4x256xi1>, vector<4x256xf32>
    %cst_7 = arith.constant dense<0.000000e+00> : vector<4xf32>
    %17 = vector.multi_reduction <add>, %16, %cst_7 [1] : vector<4x256xf32> to vector<4xf32>
    %18 = vector.shape_cast %17 : vector<4xf32> to vector<4x1xf32>
    %cst_8 = arith.constant 1.000000e+00 : f32
    %19 = vector.broadcast %cst_8 : f32 to vector<4x256xf32>
    %20 = arith.addf %10, %19 : vector<4x256xf32>
    %21 = arith.select %14, %20, %10 : vector<4x256xi1>, vector<4x256xf32>
    %cst_9 = arith.constant dense<0.000000e+00> : vector<4xf32>
    %22 = vector.multi_reduction <add>, %21, %cst_9 [1] : vector<4x256xf32> to vector<4xf32>
    %23 = vector.shape_cast %22 : vector<4xf32> to vector<4x1xf32>
    %c0_10 = arith.constant 0 : index
    %c0_11 = arith.constant 0 : index
    %c0_12 = arith.constant 0 : index
    %24 = vector.load %arg4[%c0_10, %c0_11, %c0_12] : memref<1x4x1xf32, #tpu.memory_space<vmem>>, vector<1x4x1xf32>
    %25 = vector.shape_cast %18 : vector<4x1xf32> to vector<1x4x1xf32>
    %26 = arith.addf %24, %25 : vector<1x4x1xf32>
    %c0_13 = arith.constant 0 : index
    %c0_14 = arith.constant 0 : index
    %c0_15 = arith.constant 0 : index
    %27 = vector.load %arg4[%c0_13, %c0_14, %c0_15] : memref<1x4x1xf32, #tpu.memory_space<vmem>>, vector<1x4x1xf32>
    tpu.vector_store %arg4[%c0_13, %c0_14, %c0_15], %26 {strides = array<i32>} : memref<1x4x1xf32, #tpu.memory_space<vmem>>, vector<1x4x1xf32>,
    %c0_16 = arith.constant 0 : index
    %c0_17 = arith.constant 0 : index
    %c0_18 = arith.constant 0 : index
    %28 = vector.load %arg5[%c0_16, %c0_17, %c0_18] : memref<1x4x1xf32, #tpu.memory_space<vmem>>, vector<1x4x1xf32>
    %29 = vector.shape_cast %23 : vector<4x1xf32> to vector<1x4x1xf32>
    %30 = arith.addf %28, %29 : vector<1x4x1xf32>
    %c0_19 = arith.constant 0 : index
    %c0_20 = arith.constant 0 : index
    %c0_21 = arith.constant 0 : index
    %31 = vector.load %arg5[%c0_19, %c0_20, %c0_21] : memref<1x4x1xf32, #tpu.memory_space<vmem>>, vector<1x4x1xf32>
    tpu.vector_store %arg5[%c0_19, %c0_20, %c0_21], %30 {strides = array<i32>} : memref<1x4x1xf32, #tpu.memory_space<vmem>>, vector<1x4x1xf32>,
    return
  }
  func.func @transform_0(%arg0: i32, %arg1: i32) -> (i32, i32) {
    %c1_i32 = arith.constant 1 : i32
    %0 = arith.muli %arg0, %c1_i32 : i32
    %1 = arith.addi %0, %arg1 : i32
    %c0_i32 = arith.constant 0 : i32
    %c0_i32_0 = arith.constant 0 : i32
    return %c0_i32, %1 : i32, i32
  }
  func.func @transform_1(%arg0: i32, %arg1: i32) -> (i32, i32) {
    %c1_i32 = arith.constant 1 : i32
    %0 = arith.muli %arg0, %c1_i32 : i32
    %1 = arith.addi %0, %arg1 : i32
    %c0_i32 = arith.constant 0 : i32
    %c0_i32_0 = arith.constant 0 : i32
    return %c0_i32, %1 : i32, i32
  }
  func.func @transform_2(%arg0: i32, %arg1: i32) -> (i32, i32, i32) {
    %c0_i32 = arith.constant 0 : i32
    %c0_i32_0 = arith.constant 0 : i32
    %c0_i32_1 = arith.constant 0 : i32
    return %arg0, %c0_i32, %c0_i32_0 : i32, i32, i32
  }
  func.func @transform_3(%arg0: i32, %arg1: i32) -> (i32, i32, i32) {
    %c0_i32 = arith.constant 0 : i32
    %c0_i32_0 = arith.constant 0 : i32
    %c0_i32_1 = arith.constant 0 : i32
    return %arg0, %c0_i32, %c0_i32_0 : i32, i32, i32
  }
}

</mosaic_0001>

<bundles_post_ra>
// kernel: tpu_custom_call.1
= control target key start
LH: loop header
LB: loop body
LE: loop exit
PB: predicated region body
PF: predicated region fallthrough
CT: control target
= control target key end

     0   :  { %9 = vsyncpa [#allocation3], 0  ;;  %s213_s0 = inlined_call_operand.hbm [shape: f32[4,256], index: 0, kind: input, shape index: {}]   ;;  %s214_s1 = inlined_call_operand.hbm [shape: s32[1,256], index: 1, kind: input, shape index: {}]   ;;  %s215_s2 = inlined_call_operand.vmem [shape: f32[1,4,1], index: 2, kind: output, shape index: {0}]   ;;  %s216_s3 = inlined_call_operand.vmem [shape: f32[1,4,1], index: 3, kind: output, shape index: {1}]  }
   0x1   :  { %10 = vsyncpa [#allocation5], 0  ;;  %s162_s12 = smov [#allocation2]   ;;  %s163_s14 = smov [#allocation4]  }
   0x2   :  { %s21_s13 = sshll.u32 %s162_s12, 4  ;;  %s35_s15 = sshll.u32 %s163_s14, 4  ;;  %s22_s13 = int_to_ptr.vmem [resolvable:$true] %s21_s13  ;;  %s36_s15 = int_to_ptr.vmem [resolvable:$true] %s35_s15 }
   0x3   :  { %s126_s16 = scalar_lea.vmem %s22_s13, 128  ;;  %p131_p1 = scmp.lt.s32.totalorder %s22_s13, %s22_s13 }
   0x4   :  { %p127_p0 = scmp.ne.s32.totalorder %s22_s13, %s126_s16  ;;  %p132_p2 = scmp.lt.s32.totalorder %s126_s16, %s126_s16 }
   0x6   :  { %p133_p3 = por %p132_p2, %p131_p1 }
   0x8   :  { %p134_p4 = pnand %p133_p3, %p127_p0 }
   0xa   :  { %137 = shalt.err (!%p134_p4)
}
   0xb   :  { %24 = dma.hbm_to_vmem [thread:$0]  %s213_s0, 128, %s22_s13, [#allocation3]  }
   0xc   :  { %s146_s19 = scalar_lea.vmem %s36_s15, 32  ;;  %p151_p6 = scmp.lt.s32.totalorder %s36_s15, %s36_s15 }
   0xd   :  { %p147_p5 = scmp.ne.s32.totalorder %s36_s15, %s146_s19  ;;  %p152_p7 = scmp.lt.s32.totalorder %s146_s19, %s146_s19 }
   0xf   :  { %p153_p8 = por %p152_p7, %p151_p6 }
  0x11   :  { %p154_p9 = pnand %p153_p8, %p147_p5 }
  0x13   :  { %157 = shalt.err (!%p154_p9)
}
  0x14   :  { %38 = dma.hbm_to_vmem [thread:$0]  %s214_s1, 32, %s36_s15, [#allocation5]  }
  0x15   :  { %158 = dma.done.wait [#allocation3], 128  }
  0x16   :  { %159 = vsyncadd [#allocation3], 4294967168 }
  0x17   :  { %160 = dma.done.wait [#allocation5], 32  }
  0x18   :  { %161 = vsyncadd [#allocation5], 4294967264  ;;  %vm53_vm0 = vcmask 3072   ;;  %v164_v0 = vmov 0.0   ;;  %v56_v1 = vld [vmem:[#allocation2] sm:$0xff]  ;;  %v62_v3 = vlaneseq  ;;  %vm79_vm2 = vcmask 1043456  }
  0x19   :  { %54 = vst.msk [vmem:[%s215_s2] sm:$0xf] %vm53_vm0, %v164_v0  ;;  %55 = vst.msk [vmem:[%s216_s3] sm:$0xf] %vm53_vm0, %v164_v0  ;;  %v57_v2 = vmul.f32 0.5, %v56_v1 }
  0x1a   :  { %v63_v4 = vshrl.u32 %v62_v3, 7  ;;  %v61_v6 = vld [vmem:[#allocation4] sm:$0x3] }
  0x1b   :  { %116 = vtanh.f32 %v57_v2 }
  0x1c   :  { %v66_v5 = vsub.s32 0, %v63_v4  ;;  %v70_v7 = vsub.s32 1, %v63_v4 }
  0x1e   :  { %v67_v8 = vrot.slane %v61_v6, %v66_v5  ;;  %v71_v10 = vrot.slane %v61_v6, %v70_v7 }
  0x20   :  { %vm72_vm1 = vcmp.eq.s32.totalorder %v67_v8, %v63_v4  ;;  %vm73_vm3 = vcmp.eq.s32.totalorder %v71_v10, %v63_v4  ;;  %v96_v26 = vld [vmem:[%s215_s2] sm:$0xf] }
  0x21   :  { %v100_v29 = vld [vmem:[%s216_s3] sm:$0xf] }
  0x28   :  { %v117_v9 = vpop.eup %116 }
  0x29   :  { %v59_v11 = vadd.f32 1.0, %v117_v9 }
  0x2b   :  { %v60_v12 = vmul.f32 0.5, %v59_v11 }
  0x2d   :  { %v75_v13 = vcombine.high %v60_v12, %v60_v12  ;;  %v77_v14 = vsel %vm72_vm1, %v60_v12, 0.0  ;;  %v85_v15 = vadd.f32 1.0, %v60_v12 }
  0x2e   :  { %v80_v16 = vsel %vm79_vm2, %v77_v14, 0.0 }
  0x2f   :  { %v78_v17 = vsel %vm73_vm3, %v75_v13, 0.0  ;;  %v87_v18 = vcombine.high %v85_v15, %v85_v15  ;;  %v89_v19 = vsel %vm72_vm1, %v85_v15, %v60_v12 }
  0x30   :  { %v81_v20 = vsel %vm79_vm2, %v78_v17, 0.0  ;;  %v91_v21 = vsel %vm79_vm2, %v89_v19, 0.0 }
  0x31   :  { %v82_v22 = vadd.f32 %v81_v20, %v80_v16  ;;  %v90_v23 = vsel %vm73_vm3, %v87_v18, %v75_v13 }
  0x32   :  { %v92_v24 = vsel %vm79_vm2, %v90_v23, 0.0 }
  0x33   :  { %83 = vadd.xlane.f32.xlu0 %v82_v22  ;;  %v93_v25 = vadd.f32 %v92_v24, %v91_v21 }
  0x37   :  { %94 = vadd.xlane.f32.xlu0 %v93_v25 }
  0xbc   :  { %v84_v27 = vpop.xlane.xlu0 %83 }
  0xbd   :  { %v97_v28 = vadd.f32 %v96_v26, %v84_v27 }
  0xbf   :  { %99 = vst.msk [vmem:[%s215_s2] sm:$0xf] %vm53_vm0, %v97_v28 }
  0xc0   :  { %v95_v30 = vpop.xlane.xlu0 %94 }
  0xc1   :  { %v101_v31 = vadd.f32 %v100_v29, %v95_v30 }
  0xc3   :  { %102 = vst.msk [vmem:[%s216_s3] sm:$0xf] %vm53_vm0, %v101_v31 }
  0xc4   :  { %111 = vsyncpa [#allocation3], 1 }
  0xc5   :  { %112 = vsyncpa [#allocation5], 1 }

</bundles_post_ra>
